<compile_context>
chip_gen: v6e
topology: v6e:2x2x1
jax: 0.10.0
libtpu: 0.0.40
codegen_flags: <defaults>
</compile_context>

<pallas_src>
import functools

import jax
import jax.numpy as jnp
from jax import lax
from jax.experimental import pallas as pl
from jax.experimental.pallas import tpu as pltpu

HIDDEN = 64
LANE = 128        # lane alignment for the batch tile (output lanes = batch)
SUBLANE = 8       # f32 sublane packing: pad the logit dim (2) up to 8 rows


def _round_up(n, m):
    return (n + m - 1) // m * m


def _mlp_kernel(x_ref, w1_ref, b1_ref, w2_ref, b2_ref, w3t_ref, b3t_ref, o_ref):
    # Everything in f32: MXU accumulates in f32 and the compute is fully hidden
    # under the x-read / logit-write DMA, so no bf16 casts are needed.
    x = x_ref[...]                                                  # (tile_b, in)
    h1 = jnp.dot(x, w1_ref[...], preferred_element_type=jnp.float32) + b1_ref[...]
    h1 = jnp.maximum(h1, 0.0)
    h2 = jnp.dot(h1, w2_ref[...], preferred_element_type=jnp.float32) + b2_ref[...]
    h2 = jnp.maximum(h2, 0.0)
    # Transposed logits: (OUT_SUB, tile_b) = w3t (OUT_SUB, 64) x h2^T.
    # Contract the last dim of both operands so no explicit transpose of h2 or
    # of the result is ever materialized (same pattern as Q @ K^T).
    out_t = lax.dot_general(w3t_ref[...], h2,
                            dimension_numbers=(((1,), (1,)), ((), ())),
                            preferred_element_type=jnp.float32)
    o_ref[...] = (out_t + b3t_ref[...]).astype(o_ref.dtype)         # (OUT_SUB, tile_b)


@functools.partial(jax.jit, static_argnames=("tile_b",))
def _forward_t(x, w1, b1, w2, b2, w3t, b3t, tile_b):
    batch, in_feat = x.shape
    out_sub = w3t.shape[0]
    grid = (pl.cdiv(batch, tile_b),)
    return pl.pallas_call(
        _mlp_kernel,
        out_shape=jax.ShapeDtypeStruct((out_sub, batch), jnp.float32),
        grid=grid,
        in_specs=[
            # x: one batch tile per grid step (pipelined HBM <-> VMEM DMA).
            # The last block may be ragged: OOB rows hold garbage that never
            # mixes into valid rows (all ops are row-wise w.r.t. batch) and the
            # matching output columns are dropped by the pipeline / sliced off.
            pl.BlockSpec((tile_b, in_feat), lambda i: (i, 0)),
            # weights / biases: constant block index -> resident in VMEM.
            pl.BlockSpec((in_feat, HIDDEN), lambda i: (0, 0)),
            pl.BlockSpec((1, HIDDEN), lambda i: (0, 0)),
            pl.BlockSpec((HIDDEN, HIDDEN), lambda i: (0, 0)),
            pl.BlockSpec((1, HIDDEN), lambda i: (0, 0)),
            pl.BlockSpec((out_sub, HIDDEN), lambda i: (0, 0)),
            pl.BlockSpec((out_sub, 1), lambda i: (0, 0)),
        ],
        # Transposed, lane-dense output: batch along lanes (tile_b multiple of
        # 128 or full extent), padded logits along sublanes -> unmasked vst,
        # ~16x less HBM write traffic than the old (tile_b, 128) f32 block.
        out_specs=pl.BlockSpec((out_sub, tile_b), lambda i: (0, i)),
        compiler_params=pltpu.CompilerParams(
            dimension_semantics=("parallel",)),
    )(x, w1, b1, w2, b2, w3t, b3t)


def cancer_nn_forward(x, params, tile_b=2048):
    """Forward pass of CancerNN.

    x: (batch, input_size) float32
    params: output of prepare_params() (f32 weights; layer-3 stored transposed
            and sublane-padded).
    """
    batch = x.shape[0]
    out_size = params["out_size"]
    # Effective batch tile: the full batch for small inputs (single full-extent
    # block), otherwise a lane-aligned (multiple of 128) tile. No batch padding
    # is ever materialized in HBM.
    tb = min(_round_up(tile_b, LANE), batch)
    out_t = _forward_t(x, params["w1"], params["b1"], params["w2"], params["b2"],
                       params["w3t"], params["b3t"], tb)
    # Tiny wrapper fixup: (out_sub, batch) -> (batch, out_size).
    return out_t[:out_size, :].T


def init_params(key, input_size, output_size):
    """f32 reference parameters matching CancerNN.__init__ (weights as (in, out))."""
    k1, k2, k3, k4, k5, k6 = jax.random.split(key, 6)

    def lin(kw, kb, fan_in, fan_out):
        # PyTorch default Linear init: U(-1/sqrt(fan_in), 1/sqrt(fan_in))
        bound = 1.0 / jnp.sqrt(fan_in)
        w = jax.random.uniform(kw, (fan_in, fan_out), jnp.float32, -bound, bound)
        b = jax.random.uniform(kb, (1, fan_out), jnp.float32, -bound, bound)
        return w, b

    w1, b1 = lin(k1, k2, input_size, HIDDEN)
    w2, b2 = lin(k3, k4, HIDDEN, HIDDEN)
    w3, b3 = lin(k5, k6, HIDDEN, output_size)
    return {"w1": w1, "b1": b1, "w2": w2, "b2": b2, "w3": w3, "b3": b3}


def prepare_params(p_f32, output_size):
    """Kernel-ready layout: f32 weights; layer-3 weight transposed to
       (out_sub, HIDDEN) and bias to (out_sub, 1), zero-padded to 8 sublanes."""
    out_sub = max(SUBLANE, _round_up(output_size, SUBLANE))
    w3t = jnp.zeros((out_sub, HIDDEN), jnp.float32).at[:output_size, :].set(p_f32["w3"].T)
    b3t = jnp.zeros((out_sub, 1), jnp.float32).at[:output_size, 0].set(p_f32["b3"][0])
    return {
        "w1": p_f32["w1"], "b1": p_f32["b1"],
        "w2": p_f32["w2"], "b2": p_f32["b2"],
        "w3t": w3t, "b3t": b3t,
        "out_size": output_size,
    }


def _reference_forward(x, p):
    h1 = jnp.maximum(x @ p["w1"] + p["b1"], 0.0)
    h2 = jnp.maximum(h1 @ p["w2"] + p["b2"], 0.0)
    return h2 @ p["w3"] + p["b3"]


if __name__ == "__main__":
    # Breast-cancer-style shapes: 30 input features, 2 output classes.
    input_size, output_size = 30, 2

    key = jax.random.PRNGKey(0)
    kx, kp, kx2 = jax.random.split(key, 3)
    params_f32 = init_params(kp, input_size, output_size)
    params = prepare_params(params_f32, output_size)

    # Small-batch check (single full-extent block).
    batch = 8
    x = jax.random.normal(kx, (batch, input_size), jnp.float32)
    out = jax.block_until_ready(cancer_nn_forward(x, params))
    ref = _reference_forward(x, params_f32)
    assert out.shape == (batch, output_size)
    assert jnp.allclose(out, ref, atol=2e-2, rtol=2e-2)

    # Larger batch with a ragged last block: exercises the multi-step grid,
    # resident weights and the cdiv-based tail handling (600 = 2*256 + 88).
    batch2 = 600
    x2 = jax.random.normal(kx2, (batch2, input_size), jnp.float32)
    out2 = jax.block_until_ready(cancer_nn_forward(x2, params, tile_b=256))
    ref2 = _reference_forward(x2, params_f32)
    assert out2.shape == (batch2, output_size)
    assert jnp.allclose(out2, ref2, atol=2e-2, rtol=2e-2)

    print("KERNEL_OK")
</pallas_src>

<mosaic_0001>
module attributes {stable_mosaic.version = 11 : i64} {
  func.func @_mlp_kernel(%arg0: i32, %arg1: memref<8x30xf32, #tpu.memory_space<vmem>>, %arg2: memref<30x64xf32, #tpu.memory_space<vmem>>, %arg3: memref<1x64xf32, #tpu.memory_space<vmem>>, %arg4: memref<64x64xf32, #tpu.memory_space<vmem>>, %arg5: memref<1x64xf32, #tpu.memory_space<vmem>>, %arg6: memref<8x64xf32, #tpu.memory_space<vmem>>, %arg7: memref<8x1xf32, #tpu.memory_space<vmem>>, %arg8: memref<8x8xf32, #tpu.memory_space<vmem>>) attributes {dimension_semantics = [#tpu.dimension_semantics<parallel>], iteration_bounds = array<i64: 1>, scalar_prefetch = 0 : i64, scratch_operands = 0 : i64, tpu.core_type = #tpu.core_type<tc>, window_params = [{transform_indices = @transform_0, window_bounds = array<i64: 8, 30>}, {pipeline_mode = #tpu.pipeline_mode<synchronous>, transform_indices = @transform_1, window_bounds = array<i64: 30, 64>}, {pipeline_mode = #tpu.pipeline_mode<synchronous>, transform_indices = @transform_2, window_bounds = array<i64: 1, 64>}, {pipeline_mode = #tpu.pipeline_mode<synchronous>, transform_indices = @transform_3, window_bounds = array<i64: 64, 64>}, {pipeline_mode = #tpu.pipeline_mode<synchronous>, transform_indices = @transform_4, window_bounds = array<i64: 1, 64>}, {pipeline_mode = #tpu.pipeline_mode<synchronous>, transform_indices = @transform_5, window_bounds = array<i64: 8, 64>}, {pipeline_mode = #tpu.pipeline_mode<synchronous>, transform_indices = @transform_6, window_bounds = array<i64: 8, 1>}, {transform_indices = @transform_7, window_bounds = array<i64: 8, 8>}]} {
    %c0 = arith.constant 0 : index
    %c0_0 = arith.constant 0 : index
    %0 = vector.load %arg1[%c0, %c0_0] : memref<8x30xf32, #tpu.memory_space<vmem>>, vector<8x30xf32>
    %c0_1 = arith.constant 0 : index
    %c0_2 = arith.constant 0 : index
    %1 = vector.load %arg2[%c0_1, %c0_2] : memref<30x64xf32, #tpu.memory_space<vmem>>, vector<30x64xf32>
    %cst = arith.constant dense<0.000000e+00> : vector<8x64xf32>
    %2 = tpu.matmul %0, %1, %cst {dimension_numbers = #tpu.dot_dimension_numbers<[1], [0], [0], [1], [0, 0, 1, 1], [], []>} : vector<8x30xf32>, vector<30x64xf32>, vector<8x64xf32> -> vector<8x64xf32>
    %c0_3 = arith.constant 0 : index
    %c0_4 = arith.constant 0 : index
    %3 = vector.load %arg3[%c0_3, %c0_4] : memref<1x64xf32, #tpu.memory_space<vmem>>, vector<1x64xf32>
    %4 = vector.broadcast %3 : vector<1x64xf32> to vector<8x64xf32>
    %5 = arith.addf %2, %4 : vector<8x64xf32>
    %cst_5 = arith.constant 0.000000e+00 : f32
    %6 = vector.broadcast %cst_5 : f32 to vector<8x64xf32>
    %7 = arith.maximumf %5, %6 : vector<8x64xf32>
    %c0_6 = arith.constant 0 : index
    %c0_7 = arith.constant 0 : index
    %8 = vector.load %arg4[%c0_6, %c0_7] : memref<64x64xf32, #tpu.memory_space<vmem>>, vector<64x64xf32>
    %cst_8 = arith.constant dense<0.000000e+00> : vector<8x64xf32>
    %9 = tpu.matmul %7, %8, %cst_8 {dimension_numbers = #tpu.dot_dimension_numbers<[1], [0], [0], [1], [0, 0, 1, 1], [], []>} : vector<8x64xf32>, vector<64x64xf32>, vector<8x64xf32> -> vector<8x64xf32>
    %c0_9 = arith.constant 0 : index
    %c0_10 = arith.constant 0 : index
    %10 = vector.load %arg5[%c0_9, %c0_10] : memref<1x64xf32, #tpu.memory_space<vmem>>, vector<1x64xf32>
    %11 = vector.broadcast %10 : vector<1x64xf32> to vector<8x64xf32>
    %12 = arith.addf %9, %11 : vector<8x64xf32>
    %cst_11 = arith.constant 0.000000e+00 : f32
    %13 = vector.broadcast %cst_11 : f32 to vector<8x64xf32>
    %14 = arith.maximumf %12, %13 : vector<8x64xf32>
    %c0_12 = arith.constant 0 : index
    %c0_13 = arith.constant 0 : index
    %15 = vector.load %arg6[%c0_12, %c0_13] : memref<8x64xf32, #tpu.memory_space<vmem>>, vector<8x64xf32>
    %cst_14 = arith.constant dense<0.000000e+00> : vector<8x8xf32>
    %16 = tpu.matmul %15, %14, %cst_14 {dimension_numbers = #tpu.dot_dimension_numbers<[1], [1], [0], [0], [0, 0, 1, 0], [], []>} : vector<8x64xf32>, vector<8x64xf32>, vector<8x8xf32> -> vector<8x8xf32>
    %c0_15 = arith.constant 0 : index
    %c0_16 = arith.constant 0 : index
    %17 = vector.load %arg7[%c0_15, %c0_16] : memref<8x1xf32, #tpu.memory_space<vmem>>, vector<8x1xf32>
    %18 = vector.broadcast %17 : vector<8x1xf32> to vector<8x8xf32>
    %19 = arith.addf %16, %18 : vector<8x8xf32>
    %c0_17 = arith.constant 0 : index
    %c0_18 = arith.constant 0 : index
    %20 = vector.load %arg8[%c0_17, %c0_18] : memref<8x8xf32, #tpu.memory_space<vmem>>, vector<8x8xf32>
    tpu.vector_store %arg8[%c0_17, %c0_18], %19 {strides = array<i32>} : memref<8x8xf32, #tpu.memory_space<vmem>>, vector<8x8xf32>,
    return
  }
  func.func @transform_0(%arg0: i32) -> (i32, i32) {
    %c0_i32 = arith.constant 0 : i32
    %c0_i32_0 = arith.constant 0 : i32
    return %arg0, %c0_i32 : i32, i32
  }
  func.func @transform_1(%arg0: i32) -> (i32, i32) {
    %c0_i32 = arith.constant 0 : i32
    %c0_i32_0 = arith.constant 0 : i32
    %c0_i32_1 = arith.constant 0 : i32
    return %c0_i32, %c0_i32_0 : i32, i32
  }
  func.func @transform_2(%arg0: i32) -> (i32, i32) {
    %c0_i32 = arith.constant 0 : i32
    %c0_i32_0 = arith.constant 0 : i32
    %c0_i32_1 = arith.constant 0 : i32
    return %c0_i32, %c0_i32_0 : i32, i32
  }
  func.func @transform_3(%arg0: i32) -> (i32, i32) {
    %c0_i32 = arith.constant 0 : i32
    %c0_i32_0 = arith.constant 0 : i32
    %c0_i32_1 = arith.constant 0 : i32
    return %c0_i32, %c0_i32_0 : i32, i32
  }
  func.func @transform_4(%arg0: i32) -> (i32, i32) {
    %c0_i32 = arith.constant 0 : i32
    %c0_i32_0 = arith.constant 0 : i32
    %c0_i32_1 = arith.constant 0 : i32
    return %c0_i32, %c0_i32_0 : i32, i32
  }
  func.func @transform_5(%arg0: i32) -> (i32, i32) {
    %c0_i32 = arith.constant 0 : i32
    %c0_i32_0 = arith.constant 0 : i32
    %c0_i32_1 = arith.constant 0 : i32
    return %c0_i32, %c0_i32_0 : i32, i32
  }
  func.func @transform_6(%arg0: i32) -> (i32, i32) {
    %c0_i32 = arith.constant 0 : i32
    %c0_i32_0 = arith.constant 0 : i32
    %c0_i32_1 = arith.constant 0 : i32
    return %c0_i32, %c0_i32_0 : i32, i32
  }
  func.func @transform_7(%arg0: i32) -> (i32, i32) {
    %c0_i32 = arith.constant 0 : i32
    %c0_i32_0 = arith.constant 0 : i32
    return %c0_i32, %arg0 : i32, i32
  }
}

</mosaic_0001>

<bundles_post_ra>
// kernel: _forward_t.1
= control target key start
LH: loop header
LB: loop body
LE: loop exit
PB: predicated region body
PF: predicated region fallthrough
CT: control target
= control target key end

     0   :  { %12 = vsyncpa [#allocation3], 0  ;;  %s615_s0 = inlined_call_operand.vmem [shape: f32[8,30], index: 0, kind: input, shape index: {}]   ;;  %s616_s1 = inlined_call_operand.hbm [shape: f32[30,64], index: 1, kind: input, shape index: {}]   ;;  %s617_s2 = inlined_call_operand.hbm [shape: f32[1,64], index: 2, kind: input, shape index: {}]   ;;  %s618_s3 = inlined_call_operand.hbm [shape: f32[64,64], index: 3, kind: input, shape index: {}]   ;;  %s619_s4 = inlined_call_operand.hbm [shape: f32[1,64], index: 4, kind: input, shape index: {}]   ;;  %s620_s5 = inlined_call_operand.vmem [shape: f32[8,64], index: 5, kind: input, shape index: {}]   ;;  %s621_s6 = inlined_call_operand.vmem [shape: f32[8,1], index: 6, kind: input, shape index: {}]   ;;  %s622_s7 = inlined_call_operand.hbm [shape: f32[8,8], index: 7, kind: output, shape index: {}]  }
   0x1   :  { %13 = vsyncpa [#allocation6], 0 }
   0x2   :  { %14 = vsyncpa [#allocation9], 0 }
   0x3   :  { %15 = vsyncpa [#allocation4], 0  ;;  %s538_s24 = smov [#allocation5]   ;;  %s539_s26 = smov [#allocation2]  }
   0x4   :  { %s36_s25 = sshll.u32 %s538_s24, 4  ;;  %s23_s27 = sshll.u32 %s539_s26, 4  ;;  %s37_s25 = int_to_ptr.vmem [resolvable:$true] %s36_s25  ;;  %s24_s27 = int_to_ptr.vmem [resolvable:$true] %s23_s27 }
   0x5   :  { %s438_s28 = scalar_lea.vmem %s37_s25, 16  ;;  %s442_s29 = scalar_lea.vmem %s37_s25, 32 }
   0x6   :  { %p439_p0 = scmp.ne.s32.totalorder %s37_s25, %s438_s28  ;;  %p443_p1 = scmp.lt.s32.totalorder %s37_s25, %s37_s25 }
   0x7   :  { %p444_p2 = scmp.lt.s32.totalorder %s442_s29, %s438_s28 }
   0x9   :  { %p445_p3 = por %p444_p2, %p443_p1 }
   0xb   :  { %p446_p4 = pnand %p445_p3, %p439_p0 }
   0xd   :  { %449 = shalt.err (!%p446_p4)
}
   0xe   :  { %39 = dma.hbm_to_vmem [thread:$0]  %s617_s2, 16, %s37_s25, [#allocation6]  }
   0xf   :  { %s458_s9 = scalar_lea.vmem %s24_s27, 512  ;;  %p463_p6 = scmp.lt.s32.totalorder %s24_s27, %s24_s27 }
  0x10   :  { %p459_p5 = scmp.ne.s32.totalorder %s24_s27, %s458_s9  ;;  %p464_p7 = scmp.lt.s32.totalorder %s458_s9, %s458_s9 }
  0x12   :  { %p465_p8 = por %p464_p7, %p463_p6 }
  0x14   :  { %p466_p9 = pnand %p465_p8, %p459_p5 }
  0x16   :  { %469 = shalt.err (!%p466_p9)
}
  0x17   :  { %s540_s10 = smov 128   ;;  %s541_s11 = smov 8  }
  0x18   :  { %29 = dma.hbm_to_vmem [thread:$0]  %s616_s1, 512, %s24_s27, [#allocation3], %s540_s10, %s540_s10, %s541_s11  }
  0x19   :  { %s542_s14 = smov [#allocation7]   ;;  %s543_s16 = smov [#allocation8]  }
  0x1a   :  { %s45_s15 = sshll.u32 %s542_s14, 4  ;;  %s58_s17 = sshll.u32 %s543_s16, 4  ;;  %s46_s15 = int_to_ptr.vmem [resolvable:$true] %s45_s15  ;;  %s59_s17 = int_to_ptr.vmem [resolvable:$true] %s58_s17 }
  0x1b   :  { %s478_s2 = scalar_lea.vmem %s46_s15, 1024  ;;  %p483_p11 = scmp.lt.s32.totalorder %s46_s15, %s46_s15 }
  0x1c   :  { %p479_p10 = scmp.ne.s32.totalorder %s46_s15, %s478_s2  ;;  %p484_p12 = scmp.lt.s32.totalorder %s478_s2, %s478_s2 }
  0x1e   :  { %p485_p13 = por %p484_p12, %p483_p11 }
  0x20   :  { %p486_p0 = pnand %p485_p13, %p479_p10 }
  0x22   :  { %489 = shalt.err (!%p486_p0)
}
  0x23   :  { %51 = dma.hbm_to_vmem [thread:$0]  %s618_s3, 1024, %s46_s15, [#allocation6], %s540_s10, %s540_s10, %s541_s11  }
  0x24   :  { %s498_s20 = scalar_lea.vmem %s59_s17, 16  ;;  %s502_s1 = scalar_lea.vmem %s59_s17, 32 }
  0x25   :  { %p499_p1 = scmp.ne.s32.totalorder %s59_s17, %s498_s20  ;;  %p503_p2 = scmp.lt.s32.totalorder %s59_s17, %s59_s17 }
  0x26   :  { %p504_p3 = scmp.lt.s32.totalorder %s502_s1, %s498_s20 }
  0x28   :  { %p505_p4 = por %p504_p3, %p503_p2 }
  0x2a   :  { %p506_p5 = pnand %p505_p4, %p499_p1 }
  0x2c   :  { %509 = shalt.err (!%p506_p5)
}
  0x2d   :  { %61 = dma.hbm_to_vmem [thread:$0]  %s619_s4, 16, %s59_s17, [#allocation9]  }
  0x2e   :  { %530 = dma.done.wait [#allocation3], 512  }
  0x2f   :  { %531 = vsyncadd [#allocation3], 4294966784 }
  0x30   :  { %532 = dma.done.wait [#allocation6], 1040  }
  0x31   :  { %533 = vsyncadd [#allocation6], 4294966256 }
  0x32   :  { %534 = dma.done.wait [#allocation9], 16  }
  0x33   :  { %535 = vsyncadd [#allocation9], 4294967280  ;;  %v544_v0 = vmov 0.0   ;;  %vm545_vm0 = vmmov 0   ;;  %vm94_vm1 = vcmask 1045504   ;;  %v81_v2 = vld [vmem:[#allocation2 + $0x10] sm:$0xff] }
  0x34   :  { %384 = vmatprep.subr.mxu0 %v544_v0  ;;  %392 = vmatprep.mubr.msk.f32.mxu0 %vm545_vm0, %v544_v0  ;;  %v82_v1 = vld [vmem:[#allocation2 + $0x18] sm:$0x3f]  ;;  %v80_v4 = vld [vmem:[#allocation2 + $0x8] sm:$0xff]  ;;  %v79_v7 = vld [vmem:[#allocation2] sm:$0xff]  ;;  %vm90_vm2 = vcmask 244736   ;;  %vm184_vm3 = vcmask 523264  }
  0x35   :  { %395 = vmatprep.subr.mxu1 %v544_v0  ;;  %411 = vmatprep.mubr.msk.f32.mxu1 %vm545_vm0, %v544_v0  ;;  %v176_v3 = vld [vmem:[#allocation7 + $0x38] sm:$0xff]  ;;  %v175_v5 = vld [vmem:[#allocation7 + $0x30] sm:$0xff]  ;;  %v174_v6 = vld [vmem:[#allocation7 + $0x28] sm:$0xff]  ;;  %v546_v20 = vmov 0   ;;  %s547_s26 = smov [#allocation10]   ;;  %vm342_vm4 = vcmask 64512  }
  0x36   :  { %385 = vmatpush3.msk.msra.mxu0 %vm94_vm1, %v82_v1  ;;  %396 = vmatpush3.msra.mxu1 %v176_v3  ;;  %v78_v8 = vld [vmem:[%s615_s0] sm:$0xff]  ;;  %v171_v11 = vld [vmem:[#allocation7 + $0x10] sm:$0xff]  ;;  %v170_v12 = vld [vmem:[#allocation7 + $0x8] sm:$0xff]  ;;  %s350_s27 = sshll.u32 %s547_s26, 4  ;;  %s351_s27 = int_to_ptr.vmem [resolvable:$true] %s350_s27 }
  0x37   :  { %386 = vmatprep.subr.mxu0 %v544_v0  ;;  %397 = vmatprep.subr.mxu1 %v544_v0  ;;  %v173_v9 = vld [vmem:[#allocation7 + $0x20] sm:$0xff]  ;;  %v172_v10 = vld [vmem:[#allocation7 + $0x18] sm:$0xff]  ;;  %p515_p7 = scmp.lt.s32.totalorder %s351_s27, %s351_s27 }
  0x38   :  { %387 = vmatpush3.msra.mxu0 %v81_v2  ;;  %398 = vmatpush3.msra.mxu1 %v175_v5  ;;  %v169_v13 = vld [vmem:[#allocation7] sm:$0xff]  ;;  %v361_v14 = vld [vmem:[#allocation5] ss:$0 sm:$0xff] }
  0x39   :  { %388 = vmatprep.subr.mxu0 %v544_v0  ;;  %399 = vmatprep.subr.mxu1 %v544_v0  ;;  %v260_v19 = vld [vmem:[%s621_s6] sm:$0xff]  ;;  %s510_s6 = scalar_lea.vmem %s351_s27, 128 }
  0x3a   :  { %389 = vmatpush3.msra.mxu0 %v80_v4  ;;  %400 = vmatpush3.msra.mxu1 %v174_v6  ;;  %v364_v21 = vld [vmem:[#allocation8] ss:$0 sm:$0xff]  ;;  %p511_p6 = scmp.ne.s32.totalorder %s351_s27, %s510_s6  ;;  %p516_p8 = scmp.lt.s32.totalorder %s510_s6, %s510_s6 }
  0x3b   :  { %390 = vmatprep.subr.mxu0 %v544_v0  ;;  %401 = vmatprep.subr.mxu1 %v544_v0  ;;  %v259_v26 = vld [vmem:[%s620_s5] sm:$0xff] }
  0x3c   :  { %391 = vmatpush3.msra.mxu0 %v79_v7  ;;  %402 = vmatpush3.msra.mxu1 %v173_v9  ;;  %p517_p9 = por %p516_p8, %p515_p7 }
  0x3d   :  { %393 = vmatmul.mubr.msk.f32.vlgmr.msra.gmra.mxu0 %vm90_vm2, %v78_v8  ;;  %403 = vmatprep.subr.mxu1 %v544_v0 }
  0x3e   :  { %414 = vmatprep.subr.mxu0 %v544_v0  ;;  %404 = vmatpush3.msra.mxu1 %v172_v10  ;;  %p518_p10 = pnand %p517_p9, %p511_p6 }
  0x3f   :  { %416 = vmatprep.mubr.msk.f32.mxu0 %vm545_vm0, %v544_v0  ;;  %405 = vmatprep.subr.mxu1 %v544_v0 }
  0x40   :  { %406 = vmatpush3.msra.mxu1 %v171_v11  ;;  %429 = vset.pattern.permute.xlu0 %v546_v20 }
  0x41   :  { %407 = vmatprep.subr.mxu1 %v544_v0  ;;  %263 = vperm.xlu0 %429, %v260_v19  }
  0x42   :  { %408 = vmatpush3.msra.mxu1 %v170_v12 }
  0x43   :  { %409 = vmatprep.subr.mxu1 %v544_v0 }
  0x44   :  { %410 = vmatpush3.msra.mxu1 %v169_v13 }
  0xbc   :  { %v264_v27 = vpop.permute.xlu0 %263 }
  0xfd   :  { %v164_v15 = vpop.f32.mrf.mxu0 }
  0xfe   :  { %v165_v16 = vadd.f32 %v361_v14, %v164_v15 }
  0xff   :  { %v394_v17 = vpop.f32.mrf.mxu0 }
 0x100   :  { %v168_v18 = vmax.f32 %v165_v16, 0.0 }
 0x102   :  { %412 = vmatmul.mubr.msk.f32.vlgmr.msra.gmra.mxu1 %vm184_vm3, %v168_v18 }
 0x1c2   :  { %v254_v22 = vpop.f32.mrf.mxu1 }
 0x1c3   :  { %v255_v23 = vadd.f32 %v364_v21, %v254_v22 }
 0x1c4   :  { %v413_v24 = vpop.f32.mrf.mxu1 }
 0x1c5   :  { %v258_v25 = vmax.f32 %v255_v23, 0.0 }
 0x1c7   :  { %415 = vmatpush3.xpose.msk.msra.mxu0 %vm184_vm3, %v258_v25 }
 0x1ca   :  { %417 = vmatmul.mubr.msk.f32.vlgmr.msra.gmra.mxu0 %vm184_vm3, %v259_v26 }
 0x28a   :  { %v338_v28 = vpop.f32.mrf.mxu0 }
 0x28b   :  { %v339_v29 = vadd.f32 %v338_v28, %v264_v27 }
 0x28c   :  { %v418_v30 = vpop.f32.mrf.mxu0 }
 0x28d   :  { %343 = vst.msk [vmem:[#allocation10] sm:$0xff] %vm342_vm4, %v339_v29 }
 0x28e   :  { %521 = shalt.err (!%p518_p10)
}
 0x28f   :  { %353 = dma.vmem_to_hbm [thread:$0]  %s351_s27, 128, %s622_s7, [#allocation4]  }
 0x290   :  { %536 = dma.done.wait [#allocation4], 128  }
 0x291   :  { %537 = vsyncadd [#allocation4], 4294967168 }
 0x292   :  { %357 = vsyncpa [#allocation3], 1 }
 0x293   :  { %358 = vsyncpa [#allocation6], 1 }
 0x294   :  { %359 = vsyncpa [#allocation9], 1 }
 0x295   :  { %360 = vsyncpa [#allocation4], 1 }

</bundles_post_ra>
